<compile_context>
chip_gen: v6e
topology: v6e:2x2x1
jax: 0.10.0
libtpu: 0.0.40
codegen_flags: <defaults>
</compile_context>

<pallas_src>
import math
from functools import partial

import numpy as np
import jax
import jax.numpy as jnp
from jax.experimental import pallas as pl
from jax.experimental.pallas import tpu as pltpu


def _round_up(x: int, m: int) -> int:
    return ((x + m - 1) // m) * m


# --------------------------------------------------------------------------
# Pallas kernel: tiled matmul, bias fused into the k==0 init of the resident
# f32 output block (no separate accumulator scratch).
#   p_ref : (TM, TK) bf16 patches tile
#   w_ref : (TK, TN) bf16 weight tile
#   b_ref : (1,  TN) f32 bias tile (lane dense)
#   o_ref : (TM, TN) f32 output tile, resident across the K grid axis
# --------------------------------------------------------------------------
def _conv_mm_kernel(p_ref, w_ref, b_ref, o_ref):
    k = pl.program_id(2)
    prod = jnp.dot(p_ref[...], w_ref[...], preferred_element_type=jnp.float32)

    @pl.when(k == 0)
    def _():
        # Init with bias: for the (frequent) single-K-block case this is the
        # only store -- one fused dot + bias write per output tile.
        o_ref[...] = prod + b_ref[...]

    @pl.when(k > 0)
    def _():
        o_ref[...] += prod


# --------------------------------------------------------------------------
# Forward wrapper: im2col -> tiled Pallas matmul -> GA-shaped output.
# --------------------------------------------------------------------------
def convert2d_to_ga(x, weight, bias, *, out_channels, basis_dim,
                    stride=(1, 1), padding=(1, 1),
                    tm=512, tn=512, tk=512):
    """Forward of Convert2dToGA (padding_mode='zeros', bias=True).

    x      : (B, C, H, W) f32
    weight : (out_channels * basis_dim, C, kh, kw) f32   (torch Conv2d layout)
    bias   : (out_channels * basis_dim,) f32
    returns: (B, out_channels, basis_dim, H_out, W_out) f32

    Numerical contract: operands are cast to bf16 (f32 MXU accumulation), so
    results match a bf16-quantized conv, not the exact f32 PyTorch Conv2d.
    """
    B, C, H, W = x.shape
    OK, _, kh, kw = weight.shape
    assert OK == out_channels * basis_dim
    sh, sw = stride
    ph, pw = padding
    Ho = (H + 2 * ph - kh) // sh + 1
    Wo = (W + 2 * pw - kw) // sw + 1

    # ---- im2col in bf16 (data layout only; same jit as the kernel call) ----
    xb = x.astype(jnp.bfloat16)
    xp = jnp.pad(xb, ((0, 0), (0, 0), (ph, ph), (pw, pw)))
    cols = []
    for dh in range(kh):
        for dw in range(kw):
            cols.append(xp[:, :, dh:dh + sh * (Ho - 1) + 1:sh,
                               dw:dw + sw * (Wo - 1) + 1:sw])
    # (kh, kw, B, C, Ho, Wo) -> (B, Ho, Wo, C, kh, kw) -> (M, K)
    patches = jnp.stack(cols, axis=0).reshape(kh, kw, B, C, Ho, Wo)
    patches = patches.transpose(2, 4, 5, 3, 0, 1).reshape(B * Ho * Wo, C * kh * kw)

    wmat = weight.reshape(OK, C * kh * kw).T.astype(jnp.bfloat16)   # (K, N)
    bvec = bias.astype(jnp.float32).reshape(1, OK)                  # (1, N)

    M, Kdim = patches.shape
    N = OK

    # ---- tile / pad selection --------------------------------------------
    # N: lane-dense 128-multiples (masked stores are the big perf killer).
    Npad = _round_up(N, 128)
    tn = min(tn, Npad)
    Npad = _round_up(Npad, tn)

    # M: keep >= 2 M-tiles when possible so the v7x dual TensorCores both get
    # work (the N grid typically collapses to 1 tile for conv-sized N).
    Mpad = _round_up(M, 128)
    tm = min(tm, Mpad)
    if Mpad >= 256 and Mpad // tm < 2:
        tm = _round_up(Mpad // 2, 128)
    Mpad = _round_up(Mpad, tm)

    # K: use a full-extent block (exempt from the 128 rule) when it fits,
    # avoiding any K zero-padding; only tile/pad K when it is genuinely large.
    if Kdim <= 4096:
        tk = Kdim
        Kpad = Kdim
    else:
        tk = max(128, (tk // 128) * 128)
        Kpad = _round_up(Kdim, tk)

    # ---- fused zero-padding (exact math; no extra full-array copies) ------
    p_pad = jnp.pad(patches, ((0, Mpad - M), (0, Kpad - Kdim)))
    w_pad = jnp.pad(wmat, ((0, Kpad - Kdim), (0, Npad - N)))
    b_pad = jnp.pad(bvec, ((0, 0), (0, Npad - N)))

    grid = (Mpad // tm, Npad // tn, Kpad // tk)

    # ---- device-derived VMEM budget ----------------------------------------
    try:
        vmem_cap = int(pltpu.get_tpu_info().vmem_capacity_bytes)
    except Exception:
        vmem_cap = 64 * 1024 * 1024        # conservative (v7x-sized) fallback
    vmem_est = (2 * (tm * tk + tk * tn) * 2     # bf16 input double-buffers
                + 2 * tn * 4                    # bias double-buffer
                + 2 * tm * tn * 4)              # f32 output (acc lives here)
    vmem_limit = min(max(int(1.5 * vmem_est), 8 * 1024 * 1024),
                     int(0.75 * vmem_cap))

    cost = pl.CostEstimate(
        flops=2 * Mpad * Kpad * Npad,
        transcendentals=0,
        bytes_accessed=Mpad * Kpad * 2 + Kpad * Npad * 2
                       + Mpad * Npad * 4 + Npad * 4,
    )

    out = pl.pallas_call(
        _conv_mm_kernel,
        out_shape=jax.ShapeDtypeStruct((Mpad, Npad), jnp.float32),
        grid_spec=pltpu.PrefetchScalarGridSpec(
            num_scalar_prefetch=0,
            grid=grid,
            in_specs=[
                pl.BlockSpec((tm, tk), lambda i, j, k: (i, k)),
                pl.BlockSpec((tk, tn), lambda i, j, k: (k, j)),
                pl.BlockSpec((1, tn), lambda i, j, k: (0, j)),
            ],
            out_specs=pl.BlockSpec((tm, tn), lambda i, j, k: (i, j)),
        ),
        compiler_params=pltpu.CompilerParams(
            dimension_semantics=("parallel", "parallel", "arbitrary"),
            vmem_limit_bytes=vmem_limit,
        ),
        cost_estimate=cost,
    )(p_pad, w_pad, b_pad)

    out = out[:M, :N]
    # (B*Ho*Wo, O*basis) -> (B, O, basis, Ho, Wo)
    # NOTE: the reference module's `self.out_features` attribute does not exist;
    # it is interpreted as `out_channels` (channel index = o*basis_dim + k).
    out = out.reshape(B, Ho, Wo, out_channels, basis_dim)
    return out.transpose(0, 3, 4, 1, 2)


# --------------------------------------------------------------------------
# Deterministic parameter construction (mirrors nn.Conv2d default init shapes).
# --------------------------------------------------------------------------
def init_params(key, in_channels, out_channels_total, kh, kw):
    kW, kb = jax.random.split(key)
    fan_in = in_channels * kh * kw
    bound = 1.0 / math.sqrt(fan_in)
    W = jax.random.uniform(kW, (out_channels_total, in_channels, kh, kw),
                           minval=-bound, maxval=bound, dtype=jnp.float32)
    b = jax.random.uniform(kb, (out_channels_total,),
                           minval=-bound, maxval=bound, dtype=jnp.float32)
    return W, b


if __name__ == "__main__":
    # Metric: Cl(2,0) Euclidean plane GA -> basis {1, e1, e2, e12}
    basis_dim = 4
    batch, in_channels, H, W = 2, 4, 16, 16
    out_channels = 8
    kh = kw = 3
    stride = (1, 1)
    padding = (1, 1)

    key = jax.random.PRNGKey(0)
    kx, kp = jax.random.split(key)
    weight, bias = init_params(kp, in_channels, out_channels * basis_dim, kh, kw)
    x = jax.random.normal(kx, (batch, in_channels, H, W), dtype=jnp.float32)

    fwd = jax.jit(partial(convert2d_to_ga,
                          out_channels=out_channels, basis_dim=basis_dim,
                          stride=stride, padding=padding))
    out = jax.block_until_ready(fwd(x, weight, bias))

    # Reference: XLA conv on bf16-quantized operands (kernel contract: bf16
    # inputs with f32 MXU accumulation), reshaped exactly like the torch module.
    xq = x.astype(jnp.bfloat16).astype(jnp.float32)
    wq = weight.astype(jnp.bfloat16).astype(jnp.float32)
    ref = jax.lax.conv_general_dilated(
        xq, wq, window_strides=stride,
        padding=((padding[0], padding[0]), (padding[1], padding[1])),
        dimension_numbers=("NCHW", "OIHW", "NCHW"))
    ref = ref + bias[None, :, None, None]
    Ho = (H + 2 * padding[0] - kh) // stride[0] + 1
    Wo = (W + 2 * padding[1] - kw) // stride[1] + 1
    ref = ref.reshape(batch, out_channels, basis_dim, Ho, Wo)

    assert out.shape == (batch, out_channels, basis_dim, Ho, Wo)
    np.testing.assert_allclose(np.asarray(out), np.asarray(ref),
                               rtol=1e-4, atol=1e-4)

    print("KERNEL_OK")
</pallas_src>

<mosaic_0001>
module attributes {stable_mosaic.version = 11 : i64} {
  func.func @_conv_mm_kernel(%arg0: i32, %arg1: i32, %arg2: i32, %arg3: memref<256x36xbf16, #tpu.memory_space<vmem>>, %arg4: memref<36x128xbf16, #tpu.memory_space<vmem>>, %arg5: memref<1x128xf32, #tpu.memory_space<vmem>>, %arg6: memref<256x128xf32, #tpu.memory_space<vmem>>) attributes {dimension_semantics = [#tpu.dimension_semantics<parallel>, #tpu.dimension_semantics<parallel>, #tpu.dimension_semantics<arbitrary>], iteration_bounds = array<i64: 2, 1, 1>, scalar_prefetch = 0 : i64, scratch_operands = 0 : i64, tpu.core_type = #tpu.core_type<tc>, window_params = [{transform_indices = @transform_0, window_bounds = array<i64: 256, 36>}, {transform_indices = @transform_1, window_bounds = array<i64: 36, 128>}, {transform_indices = @transform_2, window_bounds = array<i64: 1, 128>}, {transform_indices = @transform_3, window_bounds = array<i64: 256, 128>}]} {
    %c0 = arith.constant 0 : index
    %c0_0 = arith.constant 0 : index
    %0 = vector.load %arg3[%c0, %c0_0] : memref<256x36xbf16, #tpu.memory_space<vmem>>, vector<256x36xbf16>
    %c0_1 = arith.constant 0 : index
    %c0_2 = arith.constant 0 : index
    %1 = vector.load %arg4[%c0_1, %c0_2] : memref<36x128xbf16, #tpu.memory_space<vmem>>, vector<36x128xbf16>
    %cst = arith.constant dense<0.000000e+00> : vector<256x128xf32>
    %2 = tpu.matmul %0, %1, %cst {dimension_numbers = #tpu.dot_dimension_numbers<[1], [0], [0], [1], [0, 0, 1, 1], [], []>} : vector<256x36xbf16>, vector<36x128xbf16>, vector<256x128xf32> -> vector<256x128xf32>
    %c0_i32 = arith.constant 0 : i32
    %3 = arith.cmpi eq, %arg2, %c0_i32 : i32
    %4 = arith.extui %3 : i1 to i32
    %c0_i32_3 = arith.constant 0 : i32
    %5 = arith.cmpi ne, %4, %c0_i32_3 : i32
    scf.if %5 {
      %c0_6 = arith.constant 0 : index
      %c0_7 = arith.constant 0 : index
      %9 = vector.load %arg5[%c0_6, %c0_7] : memref<1x128xf32, #tpu.memory_space<vmem>>, vector<1x128xf32>
      %10 = vector.broadcast %9 : vector<1x128xf32> to vector<256x128xf32>
      %11 = arith.addf %2, %10 : vector<256x128xf32>
      %c0_8 = arith.constant 0 : index
      %c0_9 = arith.constant 0 : index
      %12 = vector.load %arg6[%c0_8, %c0_9] : memref<256x128xf32, #tpu.memory_space<vmem>>, vector<256x128xf32>
      tpu.vector_store %arg6[%c0_8, %c0_9], %11 {strides = array<i32>} : memref<256x128xf32, #tpu.memory_space<vmem>>, vector<256x128xf32>,
    } else {
    }
    %c0_i32_4 = arith.constant 0 : i32
    %6 = arith.cmpi sgt, %arg2, %c0_i32_4 : i32
    %7 = arith.extui %6 : i1 to i32
    %c0_i32_5 = arith.constant 0 : i32
    %8 = arith.cmpi ne, %7, %c0_i32_5 : i32
    scf.if %8 {
      %c0_6 = arith.constant 0 : index
      %c0_7 = arith.constant 0 : index
      %9 = vector.load %arg6[%c0_6, %c0_7] : memref<256x128xf32, #tpu.memory_space<vmem>>, vector<256x128xf32>
      %10 = arith.addf %9, %2 : vector<256x128xf32>
      %c0_8 = arith.constant 0 : index
      %c0_9 = arith.constant 0 : index
      %11 = vector.load %arg6[%c0_8, %c0_9] : memref<256x128xf32, #tpu.memory_space<vmem>>, vector<256x128xf32>
      tpu.vector_store %arg6[%c0_8, %c0_9], %10 {strides = array<i32>} : memref<256x128xf32, #tpu.memory_space<vmem>>, vector<256x128xf32>,
    } else {
    }
    return
  }
  func.func @transform_0(%arg0: i32, %arg1: i32, %arg2: i32) -> (i32, i32) {
    %c0_i32 = arith.constant 0 : i32
    return %arg0, %arg2 : i32, i32
  }
  func.func @transform_1(%arg0: i32, %arg1: i32, %arg2: i32) -> (i32, i32) {
    %c0_i32 = arith.constant 0 : i32
    return %arg2, %arg1 : i32, i32
  }
  func.func @transform_2(%arg0: i32, %arg1: i32, %arg2: i32) -> (i32, i32) {
    %c0_i32 = arith.constant 0 : i32
    %c0_i32_0 = arith.constant 0 : i32
    return %c0_i32, %arg1 : i32, i32
  }
  func.func @transform_3(%arg0: i32, %arg1: i32, %arg2: i32) -> (i32, i32) {
    %c0_i32 = arith.constant 0 : i32
    return %arg0, %arg1 : i32, i32
  }
}

</mosaic_0001>

<bundles_post_ra>
// kernel: convert2d_to_ga.1
= control target key start
LH: loop header
LB: loop body
LE: loop exit
PB: predicated region body
PF: predicated region fallthrough
CT: control target
= control target key end

     0   :  { %s1093_s12 = smov 0   ;;  %s1095_s13 = smov 0   ;;  %s1244_s0 = inlined_call_operand.vmem [shape: bf16[512,36], index: 0, kind: input, shape index: {}]   ;;  %s1245_s1 = inlined_call_operand.vmem [shape: bf16[36,128], index: 1, kind: input, shape index: {}]   ;;  %s1246_s2 = inlined_call_operand.vmem [shape: f32[1,128], index: 2, kind: input, shape index: {}]   ;;  %s1247_s3 = inlined_call_operand.vmem [shape: f32[512,128], index: 3, kind: output, shape index: {}]  }
   0x1   :  { %s1097_s14 = smov 0  }
   0x2 LB: > { %s32_s15 = sadd.s32 1, %s1067_s13  ;;  %p898_p0 = scmp.ge.s32.totalorder %s1071_s14, 1  ;;  %s1071_s14 = sphi %s1097_s14, %s13_s14   ;;  %s1067_s13 = sphi %s1095_s13, %s1249_s13   ;;  %s1063_s12 = sphi %s1093_s12, %s1248_s12  }
   0x3   : > { %p34_p1 = scmp.ge.s32.totalorder %s32_s15, 2  ;;  %p188_p2 = scmp.lt.s32.totalorder %s1071_s14, 3 }
   0x5   : > { %s1251_s15 = smov (%p34_p1, %s32_s15), 0  ;;  %p189_p3 = pnand %p898_p0, %p188_p2 }
   0x6   : > { %s899_s20 = sshll.u32 (!%p189_p3), %s1063_s12, 5 }
   0x7   : > { %192 = sbr.rel (%p189_p3) target bundleno = 251 (0xfb), region = 32  ;;  %p230_p4 = scmp.lt.s32.totalorder (!%p189_p3), %s899_s20, 63 }
   0xc   : > { %v1030_v0 = vld [vmem:[%s1245_s1 + $0x10] ss:$0 sps:$4 sm:$0x33]   ;;  %vm441_vm0 = vcmask 1041408   ;;  %v1031_v1 = vld [vmem:[%s1245_s1 + $0x8] sm:$0xff]   ;;  %v1032_v3 = vld [vmem:[%s1245_s1] sm:$0xff]  }
   0xd   : > { %1004 = vmatprep.subr.msk.bf16.mxu0 %vm441_vm0, %v1030_v0  ;;  %1005 = vmatprep.subr.msk.bf16.mxu1 %vm441_vm0, %v1030_v0  ;;  %v443_v2 = vsel %vm441_vm0, %v1030_v0, 0  ;;  %s1253_s20 = smov (!%p230_p4, %s899_s20), 63  ;;  %vm392_vm1 = vcmask 293888   ;;  %v1164_v20 = vld [vmem:[%s1246_s2] ss:$0 sm:$0xff] }
   0xe   : > { %961 = vmatpush3.bf16.msra.mxu0 %v443_v2  ;;  %1001 = vmatpush3.bf16.msra.mxu1 %v443_v2  ;;  %s900_s23 = sshll.u32 %s1253_s20, 2  ;;  %s902_s27 = sshll.u32 %s1253_s20, 3 }
   0xf   : > { %962 = vmatprep.subr.bf16.mxu0 %v1031_v1  ;;  %999 = vmatprep.subr.bf16.mxu1 %v1031_v1  ;;  %s1126_s26 = scalar_lea.vmem %s1244_s0, %s900_s23  ;;  %s1169_s5 = scalar_lea.vmem %s1247_s3, %s902_s27 }
  0x10   : > { %v1033_v4 = vld [vmem:[%s1126_s26] sm:$0xff]   ;;  %v1035_v6 = vld [vmem:[%s1126_s26 + $0x8] sm:$0xff]   ;;  %v1037_v8 = vld [vmem:[%s1126_s26 + $0x10] sm:$0xff]  }
  0x11   : > { %v1034_v5 = vld [vmem:[%s1126_s26 + $0x40] sm:$0xff]   ;;  %966 = vmatprep.mubr.msk.bf16.mxu0 %vm392_vm1, %v1033_v4  ;;  %v1036_v7 = vld [vmem:[%s1126_s26 + $0x48] sm:$0xff]   ;;  %v1038_v9 = vld [vmem:[%s1126_s26 + $0x50] sm:$0xff]  }
  0x12   : > { %963 = vmatpush3.bf16.msra.mxu0 %v1031_v1  ;;  %1002 = vmatpush3.bf16.msra.mxu1 %v1031_v1  ;;  %v1039_v10 = vld [vmem:[%s1126_s26 + $0x18] sm:$0xff]   ;;  %v1041_v12 = vld [vmem:[%s1126_s26 + $0x20] sm:$0xff]   ;;  %v1043_v14 = vld [vmem:[%s1126_s26 + $0x28] sm:$0xff]  }
  0x13   : > { %964 = vmatprep.subr.bf16.mxu0 %v1032_v3  ;;  %1000 = vmatprep.subr.bf16.mxu1 %v1032_v3  ;;  %v1040_v11 = vld [vmem:[%s1126_s26 + $0x58] sm:$0xff]   ;;  %v1042_v13 = vld [vmem:[%s1126_s26 + $0x60] sm:$0xff]   ;;  %v1044_v15 = vld [vmem:[%s1126_s26 + $0x68] sm:$0xff]  }
  0x14   : > { %982 = vmatprep.mubr.msk.bf16.mxu1 %vm392_vm1, %v1034_v5  ;;  %v1045_v16 = vld [vmem:[%s1126_s26 + $0x30] sm:$0xff]   ;;  %v1047_v18 = vld [vmem:[%s1126_s26 + $0x38] sm:$0xff]  }
  0x15   : > { %v1046_v17 = vld [vmem:[%s1126_s26 + $0x70] sm:$0xff]   ;;  %v1048_v19 = vld [vmem:[%s1126_s26 + $0x78] sm:$0xff]  }
  0x16   : > { %965 = vmatpush3.bf16.msra.mxu0 %v1032_v3  ;;  %1003 = vmatpush3.bf16.msra.mxu1 %v1032_v3 }
  0x19   : > { %967 = vmatmul.mubr.msk.bf16.vlgmr.msra.gmra.mxu0 %vm392_vm1, %v1035_v6  ;;  %983 = vmatmul.mubr.msk.bf16.vlgmr.msra.gmra.mxu1 %vm392_vm1, %v1036_v7 }
  0x1a   : > { %970 = vmatprep.mubr.msk.bf16.mxu0 %vm392_vm1, %v1037_v8  ;;  %986 = vmatprep.mubr.msk.bf16.mxu1 %vm392_vm1, %v1038_v9 }
  0x21   : > { %971 = vmatmul.mubr.msk.bf16.gmra.mxu0 %vm392_vm1, %v1039_v10  ;;  %987 = vmatmul.mubr.msk.bf16.gmra.mxu1 %vm392_vm1, %v1040_v11 }
  0x22   : > { %974 = vmatprep.mubr.msk.bf16.mxu0 %vm392_vm1, %v1041_v12  ;;  %990 = vmatprep.mubr.msk.bf16.mxu1 %vm392_vm1, %v1042_v13 }
  0x29   : > { %975 = vmatmul.mubr.msk.bf16.gmra.mxu0 %vm392_vm1, %v1043_v14  ;;  %991 = vmatmul.mubr.msk.bf16.gmra.mxu1 %vm392_vm1, %v1044_v15 }
  0x2a   : > { %978 = vmatprep.mubr.msk.bf16.mxu0 %vm392_vm1, %v1045_v16  ;;  %994 = vmatprep.mubr.msk.bf16.mxu1 %vm392_vm1, %v1046_v17 }
  0x31   : > { %979 = vmatmul.mubr.msk.bf16.gmra.mxu0 %vm392_vm1, %v1047_v18  ;;  %995 = vmatmul.mubr.msk.bf16.gmra.mxu1 %vm392_vm1, %v1048_v19 }
  0xd9   : > { %v968_v21 = vpop.f32.mrf.mxu0  ;;  %v984_v22 = vpop.f32.mrf.mxu1 }
  0xda   : > { %v619_v23 = vadd.f32 %v968_v21, %v1164_v20  ;;  %v635_v24 = vadd.f32 %v984_v22, %v1164_v20 }
  0xdb   : > { %v479_v25 = vpop.f32.mrf.mxu0  ;;  %v543_v26 = vpop.f32.mrf.mxu1 }
  0xdc   : > { %651 = vst [vmem:[%s1169_s5 + $0x10] sm:$0xff] %v619_v23  ;;  %667 = vst [vmem:[%s1169_s5 + $0x90] sm:$0xff] %v635_v24  ;;  %v617_v27 = vadd.f32 %v1164_v20, %v479_v25  ;;  %v633_v28 = vadd.f32 %v1164_v20, %v543_v26 }
  0xdd   : > { %v969_v29 = vpop.f32.mrf.mxu0  ;;  %v985_v30 = vpop.f32.mrf.mxu1 }
  0xde   : > { %649 = vst [vmem:[%s1169_s5] sm:$0xff] %v617_v27  ;;  %665 = vst [vmem:[%s1169_s5 + $0x80] sm:$0xff] %v633_v28  ;;  %v620_v31 = vadd.f32 %v969_v29, %v1164_v20  ;;  %v636_v32 = vadd.f32 %v985_v30, %v1164_v20 }
  0xdf   : > { %v482_v33 = vpop.f32.mrf.mxu0  ;;  %v546_v34 = vpop.f32.mrf.mxu1 }
  0xe0   : > { %652 = vst [vmem:[%s1169_s5 + $0x18] sm:$0xff] %v620_v31  ;;  %668 = vst [vmem:[%s1169_s5 + $0x98] sm:$0xff] %v636_v32  ;;  %v618_v35 = vadd.f32 %v1164_v20, %v482_v33  ;;  %v634_v36 = vadd.f32 %v1164_v20, %v546_v34 }
  0xe1   : > { %v972_v37 = vpop.f32.mrf.mxu0  ;;  %v988_v38 = vpop.f32.mrf.mxu1 }
  0xe2   : > { %650 = vst [vmem:[%s1169_s5 + $0x8] sm:$0xff] %v618_v35  ;;  %666 = vst [vmem:[%s1169_s5 + $0x88] sm:$0xff] %v634_v36  ;;  %v623_v39 = vadd.f32 %v972_v37, %v1164_v20  ;;  %v639_v40 = vadd.f32 %v988_v38, %v1164_v20 }
  0xe3   : > { %v495_v41 = vpop.f32.mrf.mxu0  ;;  %v559_v42 = vpop.f32.mrf.mxu1 }
  0xe4   : > { %655 = vst [vmem:[%s1169_s5 + $0x30] sm:$0xff] %v623_v39  ;;  %671 = vst [vmem:[%s1169_s5 + $0xb0] sm:$0xff] %v639_v40  ;;  %v621_v43 = vadd.f32 %v1164_v20, %v495_v41  ;;  %v637_v44 = vadd.f32 %v1164_v20, %v559_v42 }
  0xe5   : > { %v973_v45 = vpop.f32.mrf.mxu0  ;;  %v989_v46 = vpop.f32.mrf.mxu1 }
  0xe6   : > { %653 = vst [vmem:[%s1169_s5 + $0x20] sm:$0xff] %v621_v43  ;;  %669 = vst [vmem:[%s1169_s5 + $0xa0] sm:$0xff] %v637_v44  ;;  %v624_v47 = vadd.f32 %v973_v45, %v1164_v20  ;;  %v640_v48 = vadd.f32 %v989_v46, %v1164_v20 }
  0xe7   : > { %v498_v49 = vpop.f32.mrf.mxu0  ;;  %v562_v50 = vpop.f32.mrf.mxu1 }
  0xe8   : > { %656 = vst [vmem:[%s1169_s5 + $0x38] sm:$0xff] %v624_v47  ;;  %672 = vst [vmem:[%s1169_s5 + $0xb8] sm:$0xff] %v640_v48  ;;  %v622_v51 = vadd.f32 %v1164_v20, %v498_v49  ;;  %v638_v52 = vadd.f32 %v1164_v20, %v562_v50 }
  0xe9   : > { %v976_v53 = vpop.f32.mrf.mxu0  ;;  %v992_v54 = vpop.f32.mrf.mxu1 }
  0xea   : > { %654 = vst [vmem:[%s1169_s5 + $0x28] sm:$0xff] %v622_v51  ;;  %670 = vst [vmem:[%s1169_s5 + $0xa8] sm:$0xff] %v638_v52  ;;  %v627_v55 = vadd.f32 %v976_v53, %v1164_v20  ;;  %v643_v56 = vadd.f32 %v992_v54, %v1164_v20 }
  0xeb   : > { %v511_v57 = vpop.f32.mrf.mxu0  ;;  %v575_v58 = vpop.f32.mrf.mxu1 }
  0xec   : > { %659 = vst [vmem:[%s1169_s5 + $0x50] sm:$0xff] %v627_v55  ;;  %675 = vst [vmem:[%s1169_s5 + $0xd0] sm:$0xff] %v643_v56  ;;  %v625_v59 = vadd.f32 %v1164_v20, %v511_v57  ;;  %v641_v60 = vadd.f32 %v1164_v20, %v575_v58 }
  0xed   : > { %v977_v61 = vpop.f32.mrf.mxu0  ;;  %v993_v62 = vpop.f32.mrf.mxu1 }
  0xee   : > { %657 = vst [vmem:[%s1169_s5 + $0x40] sm:$0xff] %v625_v59  ;;  %673 = vst [vmem:[%s1169_s5 + $0xc0] sm:$0xff] %v641_v60  ;;  %v628_v63 = vadd.f32 %v977_v61, %v1164_v20  ;;  %v644_v0 = vadd.f32 %v993_v62, %v1164_v20 }
  0xef   : > { %v514_v1 = vpop.f32.mrf.mxu0  ;;  %v578_v2 = vpop.f32.mrf.mxu1 }
  0xf0   : > { %660 = vst [vmem:[%s1169_s5 + $0x58] sm:$0xff] %v628_v63  ;;  %676 = vst [vmem:[%s1169_s5 + $0xd8] sm:$0xff] %v644_v0  ;;  %v626_v3 = vadd.f32 %v1164_v20, %v514_v1  ;;  %v642_v4 = vadd.f32 %v1164_v20, %v578_v2 }
  0xf1   : > { %v980_v5 = vpop.f32.mrf.mxu0  ;;  %v996_v6 = vpop.f32.mrf.mxu1 }
  0xf2   : > { %658 = vst [vmem:[%s1169_s5 + $0x48] sm:$0xff] %v626_v3  ;;  %674 = vst [vmem:[%s1169_s5 + $0xc8] sm:$0xff] %v642_v4  ;;  %v631_v7 = vadd.f32 %v980_v5, %v1164_v20  ;;  %v647_v8 = vadd.f32 %v996_v6, %v1164_v20 }
  0xf3   : > { %v527_v9 = vpop.f32.mrf.mxu0  ;;  %v591_v10 = vpop.f32.mrf.mxu1 }
  0xf4   : > { %663 = vst [vmem:[%s1169_s5 + $0x70] sm:$0xff] %v631_v7  ;;  %679 = vst [vmem:[%s1169_s5 + $0xf0] sm:$0xff] %v647_v8  ;;  %v629_v11 = vadd.f32 %v1164_v20, %v527_v9  ;;  %v645_v12 = vadd.f32 %v1164_v20, %v591_v10 }
  0xf5   : > { %v981_v13 = vpop.f32.mrf.mxu0  ;;  %v997_v14 = vpop.f32.mrf.mxu1 }
  0xf6   : > { %661 = vst [vmem:[%s1169_s5 + $0x60] sm:$0xff] %v629_v11  ;;  %677 = vst [vmem:[%s1169_s5 + $0xe0] sm:$0xff] %v645_v12  ;;  %v632_v15 = vadd.f32 %v981_v13, %v1164_v20  ;;  %v648_v16 = vadd.f32 %v997_v14, %v1164_v20 }
  0xf7   : > { %v530_v17 = vpop.f32.mrf.mxu0  ;;  %v594_v18 = vpop.f32.mrf.mxu1 }
  0xf8   : > { %664 = vst [vmem:[%s1169_s5 + $0x78] sm:$0xff] %v632_v15  ;;  %680 = vst [vmem:[%s1169_s5 + $0xf8] sm:$0xff] %v648_v16  ;;  %v630_v19 = vadd.f32 %v1164_v20, %v530_v17  ;;  %v646_v21 = vadd.f32 %v1164_v20, %v594_v18 }
  0xfa   : > { %662 = vst [vmem:[%s1169_s5 + $0x68] sm:$0xff] %v630_v19  ;;  %678 = vst [vmem:[%s1169_s5 + $0xe8] sm:$0xff] %v646_v21 }
  0xfb PF: > { %s13_s14 = sadd.s32 1, %s1071_s14   ;;  %s1248_s12 = smov %s1067_s13 }
  0xfc   : > { %p10_p5 = scmp.ge.s32.totalorder %s13_s14, 4   ;;  %s1249_s13 = smov %s1251_s15 }
  0xfe   :  { %12 = sbr.rel (!%p10_p5) target bundleno = 2 (0x2), region = 76 }

</bundles_post_ra>
